<compile_context>
chip_gen: v7x
topology: tpu7x:2x2x1
jax: 0.10.0
libtpu: 0.0.40
codegen_flags: <defaults>
</compile_context>

<pallas_src>
import jax
import jax.numpy as jnp
from jax.experimental import pallas as pl
from jax.experimental.pallas import tpu as pltpu


def meta_critic_kernel(x_ref, w1_ref, b1_ref, w2_ref, b2_ref, w3_ref, b3_ref,
                       o_ref):
    # fc1: [tb, S]f32 -> bf16 cast in-kernel, MXU matmul with f32 accumulate.
    xb = x_ref[...].astype(jnp.bfloat16)
    h1 = jnp.dot(xb, w1_ref[...], preferred_element_type=jnp.float32)
    h1 = jnp.maximum(h1 + b1_ref[...], 0.0)

    # fc2: [tb, 256]bf16 @ [256, 128]bf16 -> f32, + bias, relu
    h2 = jnp.dot(h1.astype(jnp.bfloat16), w2_ref[...],
                 preferred_element_type=jnp.float32)
    h2 = jnp.maximum(h2 + b2_ref[...], 0.0)

    # fc3 (128 -> 1): VPU multiply by the weight row + XLU lane reduction
    # (avoids a 1-lane MXU matmul), then bias.
    z = jnp.sum(h2 * w3_ref[...], axis=-1, keepdims=True) + b3_ref[...]  # [tb,1]

    # Numerically stable softplus: max(z,0) + log1p(exp(-|z|))
    sp = jnp.maximum(z, 0.0) + jnp.log1p(jnp.exp(-jnp.abs(z)))

    # Per-row outputs; OOB rows of a ragged last tile are masked by Pallas on
    # the store, and the wrapper mean only covers the real B rows.
    o_ref[...] = sp


def meta_critic_forward(x, w1_t, b1, w2_t, b2, w3_row, b3, *, block_b=512):
    """x: [B, hidden_dim] f32.
    w1_t: [hidden_dim, 256], b1: [1, 256],
    w2_t: [256, 128],        b2: [1, 128],
    w3_row: [1, 128],        b3: [1, 1]   (fc3 weight stored as a row).
    Returns the scalar mean(softplus(fc3(relu(fc2(relu(fc1(x))))))).
    """
    B, S = x.shape
    H1 = w1_t.shape[1]
    H2 = w2_t.shape[1]

    # --- Batch tile: multiple of 8 sublanes, capped at block_b and at the
    #     (rounded-up) batch. No wrapper-side padding of x.
    b8 = pl.cdiv(B, 8) * 8
    tB = max(8, (min(block_b, b8) // 8) * 8)

    # --- Conservative VMEM budget cap (double-buffered f32 x tile + f32
    #     intermediates + resident bf16 weights), safe on all generations.
    weight_bytes = (S * H1 + H1 * H2) * 2 + (H1 + 2 * H2 + 1) * 4
    per_row_bytes = 2 * S * 4 + (H1 + 2 * H2) * 4 + 2 * 4
    budget = 24 * 1024 * 1024
    max_rows = max(8, (((budget - weight_bytes) // per_row_bytes) // 8) * 8)
    tB = min(tB, max_rows)

    grid = (pl.cdiv(B, tB),)

    # One-time tiny casts of the resident weights (loaded once into VMEM).
    w1b = w1_t.astype(jnp.bfloat16)
    w2b = w2_t.astype(jnp.bfloat16)

    out = pl.pallas_call(
        meta_critic_kernel,
        out_shape=jax.ShapeDtypeStruct((B, 1), jnp.float32),
        grid=grid,
        in_specs=[
            pl.BlockSpec((tB, S), lambda i: (i, 0)),      # x tile (f32, streamed)
            pl.BlockSpec((S, H1), lambda i: (0, 0)),      # W1 (resident, bf16)
            pl.BlockSpec((1, H1), lambda i: (0, 0)),      # b1
            pl.BlockSpec((H1, H2), lambda i: (0, 0)),     # W2 (resident, bf16)
            pl.BlockSpec((1, H2), lambda i: (0, 0)),      # b2
            pl.BlockSpec((1, H2), lambda i: (0, 0)),      # W3 row
            pl.BlockSpec((1, 1), lambda i: (0, 0)),       # b3
        ],
        out_specs=pl.BlockSpec((tB, 1), lambda i: (i, 0)),
        compiler_params=pltpu.CompilerParams(
            # No carried state across batch tiles -> parallel (v7x megacore).
            dimension_semantics=("parallel",),
            vmem_limit_bytes=32 * 1024 * 1024,
        ),
    )(x, w1b, b1, w2b, b2, w3_row, b3)

    # Final mean over B scalars: trivial JAX reduce on a tiny array.
    return jnp.mean(out)


def init_params(key, hidden_dim, h1=256, h2=128):
    """Matches the PyTorch module's reset_parameters: kaiming_normal_ on
    weights (gain=sqrt(2), fan_in mode) and default nn.Linear uniform bias."""
    k1, k2, k3, k4, k5, k6 = jax.random.split(key, 6)
    std1 = (2.0 / hidden_dim) ** 0.5
    std2 = (2.0 / h1) ** 0.5
    std3 = (2.0 / h2) ** 0.5
    # Weights stored pre-transposed as [in, out]; fc3 as a [1, 128] row.
    w1_t = std1 * jax.random.normal(k1, (hidden_dim, h1), dtype=jnp.float32)
    w2_t = std2 * jax.random.normal(k2, (h1, h2), dtype=jnp.float32)
    w3_row = std3 * jax.random.normal(k3, (1, h2), dtype=jnp.float32)
    bnd1 = 1.0 / (hidden_dim ** 0.5)
    bnd2 = 1.0 / (h1 ** 0.5)
    bnd3 = 1.0 / (h2 ** 0.5)
    b1 = jax.random.uniform(k4, (1, h1), jnp.float32, -bnd1, bnd1)
    b2 = jax.random.uniform(k5, (1, h2), jnp.float32, -bnd2, bnd2)
    b3 = jax.random.uniform(k6, (1, 1), jnp.float32, -bnd3, bnd3)
    return w1_t, b1, w2_t, b2, w3_row, b3


def reference(x, w1_t, b1, w2_t, b2, w3_row, b3):
    """Pure-JAX reference with the same bf16-input / f32-accumulate math."""
    h1 = jnp.dot(x.astype(jnp.bfloat16), w1_t.astype(jnp.bfloat16),
                 preferred_element_type=jnp.float32)
    h1 = jnp.maximum(h1 + b1, 0.0)
    h2 = jnp.dot(h1.astype(jnp.bfloat16), w2_t.astype(jnp.bfloat16),
                 preferred_element_type=jnp.float32)
    h2 = jnp.maximum(h2 + b2, 0.0)
    z = jnp.sum(h2 * w3_row, axis=-1, keepdims=True) + b3
    sp = jnp.maximum(z, 0.0) + jnp.log1p(jnp.exp(-jnp.abs(z)))
    return jnp.mean(sp)


if __name__ == "__main__":
    hidden_dim = 32
    batch = 8

    key = jax.random.PRNGKey(0)
    kx, kp = jax.random.split(key)
    x = jax.random.normal(kx, (batch, hidden_dim), dtype=jnp.float32)
    params = init_params(kp, hidden_dim)

    # Single-tile run.
    out = jax.block_until_ready(meta_critic_forward(x, *params))
    ref = reference(x, *params)
    assert out.shape == ()
    assert jnp.allclose(out, ref, atol=1e-3, rtol=1e-3), (out, ref)

    # Multi-tile run with a ragged last tile: exercises batch tiling,
    # Pallas OOB-write masking, and the parallel batch axis.
    x2 = jax.random.normal(jax.random.PRNGKey(1), (50, hidden_dim),
                           dtype=jnp.float32)
    out2 = jax.block_until_ready(meta_critic_forward(x2, *params, block_b=16))
    ref2 = reference(x2, *params)
    assert jnp.allclose(out2, ref2, atol=1e-3, rtol=1e-3), (out2, ref2)

    print("KERNEL_OK")
</pallas_src>

<mosaic_0001>
module attributes {stable_mosaic.version = 11 : i64} {
  func.func @meta_critic_kernel(%arg0: i32, %arg1: memref<8x32xf32, #tpu.memory_space<vmem>>, %arg2: memref<32x256xbf16, #tpu.memory_space<vmem>>, %arg3: memref<1x256xf32, #tpu.memory_space<vmem>>, %arg4: memref<256x128xbf16, #tpu.memory_space<vmem>>, %arg5: memref<1x128xf32, #tpu.memory_space<vmem>>, %arg6: memref<1x128xf32, #tpu.memory_space<vmem>>, %arg7: memref<1x1xf32, #tpu.memory_space<vmem>>, %arg8: memref<8x1xf32, #tpu.memory_space<vmem>>) attributes {dimension_semantics = [#tpu.dimension_semantics<parallel>], iteration_bounds = array<i64: 1>, scalar_prefetch = 0 : i64, scratch_operands = 0 : i64, tpu.core_type = #tpu.core_type<tc>, window_params = [{transform_indices = @transform_0, window_bounds = array<i64: 8, 32>}, {pipeline_mode = #tpu.pipeline_mode<synchronous>, transform_indices = @transform_1, window_bounds = array<i64: 32, 256>}, {pipeline_mode = #tpu.pipeline_mode<synchronous>, transform_indices = @transform_2, window_bounds = array<i64: 1, 256>}, {pipeline_mode = #tpu.pipeline_mode<synchronous>, transform_indices = @transform_3, window_bounds = array<i64: 256, 128>}, {pipeline_mode = #tpu.pipeline_mode<synchronous>, transform_indices = @transform_4, window_bounds = array<i64: 1, 128>}, {pipeline_mode = #tpu.pipeline_mode<synchronous>, transform_indices = @transform_5, window_bounds = array<i64: 1, 128>}, {pipeline_mode = #tpu.pipeline_mode<synchronous>, transform_indices = @transform_6, window_bounds = array<i64: 1, 1>}, {transform_indices = @transform_7, window_bounds = array<i64: 8, 1>}]} {
    %c0 = arith.constant 0 : index
    %c0_0 = arith.constant 0 : index
    %0 = vector.load %arg1[%c0, %c0_0] : memref<8x32xf32, #tpu.memory_space<vmem>>, vector<8x32xf32>
    %1 = arith.truncf %0 : vector<8x32xf32> to vector<8x32xbf16>
    %c0_1 = arith.constant 0 : index
    %c0_2 = arith.constant 0 : index
    %2 = vector.load %arg2[%c0_1, %c0_2] : memref<32x256xbf16, #tpu.memory_space<vmem>>, vector<32x256xbf16>
    %cst = arith.constant dense<0.000000e+00> : vector<8x256xf32>
    %3 = tpu.matmul %1, %2, %cst {dimension_numbers = #tpu.dot_dimension_numbers<[1], [0], [0], [1], [0, 0, 1, 1], [], []>} : vector<8x32xbf16>, vector<32x256xbf16>, vector<8x256xf32> -> vector<8x256xf32>
    %c0_3 = arith.constant 0 : index
    %c0_4 = arith.constant 0 : index
    %4 = vector.load %arg3[%c0_3, %c0_4] : memref<1x256xf32, #tpu.memory_space<vmem>>, vector<1x256xf32>
    %5 = vector.broadcast %4 : vector<1x256xf32> to vector<8x256xf32>
    %6 = arith.addf %3, %5 : vector<8x256xf32>
    %cst_5 = arith.constant 0.000000e+00 : f32
    %7 = vector.broadcast %cst_5 : f32 to vector<8x256xf32>
    %8 = arith.maximumf %6, %7 : vector<8x256xf32>
    %9 = arith.truncf %8 : vector<8x256xf32> to vector<8x256xbf16>
    %c0_6 = arith.constant 0 : index
    %c0_7 = arith.constant 0 : index
    %10 = vector.load %arg4[%c0_6, %c0_7] : memref<256x128xbf16, #tpu.memory_space<vmem>>, vector<256x128xbf16>
    %cst_8 = arith.constant dense<0.000000e+00> : vector<8x128xf32>
    %11 = tpu.matmul %9, %10, %cst_8 {dimension_numbers = #tpu.dot_dimension_numbers<[1], [0], [0], [1], [0, 0, 1, 1], [], []>} : vector<8x256xbf16>, vector<256x128xbf16>, vector<8x128xf32> -> vector<8x128xf32>
    %c0_9 = arith.constant 0 : index
    %c0_10 = arith.constant 0 : index
    %12 = vector.load %arg5[%c0_9, %c0_10] : memref<1x128xf32, #tpu.memory_space<vmem>>, vector<1x128xf32>
    %13 = vector.broadcast %12 : vector<1x128xf32> to vector<8x128xf32>
    %14 = arith.addf %11, %13 : vector<8x128xf32>
    %cst_11 = arith.constant 0.000000e+00 : f32
    %15 = vector.broadcast %cst_11 : f32 to vector<8x128xf32>
    %16 = arith.maximumf %14, %15 : vector<8x128xf32>
    %c0_12 = arith.constant 0 : index
    %c0_13 = arith.constant 0 : index
    %17 = vector.load %arg6[%c0_12, %c0_13] : memref<1x128xf32, #tpu.memory_space<vmem>>, vector<1x128xf32>
    %18 = vector.broadcast %17 : vector<1x128xf32> to vector<8x128xf32>
    %19 = arith.mulf %16, %18 : vector<8x128xf32>
    %cst_14 = arith.constant dense<0.000000e+00> : vector<8xf32>
    %20 = vector.multi_reduction <add>, %19, %cst_14 [1] : vector<8x128xf32> to vector<8xf32>
    %21 = vector.shape_cast %20 : vector<8xf32> to vector<8x1xf32>
    %c0_15 = arith.constant 0 : index
    %c0_16 = arith.constant 0 : index
    %22 = vector.load %arg7[%c0_15, %c0_16] : memref<1x1xf32, #tpu.memory_space<vmem>>, vector<1x1xf32>
    %23 = vector.broadcast %22 : vector<1x1xf32> to vector<8x1xf32>
    %24 = arith.addf %21, %23 : vector<8x1xf32>
    %cst_17 = arith.constant 0.000000e+00 : f32
    %25 = vector.broadcast %cst_17 : f32 to vector<8x1xf32>
    %26 = arith.maximumf %24, %25 : vector<8x1xf32>
    %27 = math.absf %24 : vector<8x1xf32>
    %cst_18 = arith.constant 0.000000e+00 : f32
    %28 = vector.broadcast %cst_18 : f32 to vector<8x1xf32>
    %29 = arith.subf %28, %27 : vector<8x1xf32>
    %30 = math.exp %29 : vector<8x1xf32>
    %31 = math.log1p %30 : vector<8x1xf32>
    %32 = arith.addf %26, %31 : vector<8x1xf32>
    %c0_19 = arith.constant 0 : index
    %c0_20 = arith.constant 0 : index
    %33 = vector.load %arg8[%c0_19, %c0_20] : memref<8x1xf32, #tpu.memory_space<vmem>>, vector<8x1xf32>
    tpu.vector_store %arg8[%c0_19, %c0_20], %32 {strides = array<i32>} : memref<8x1xf32, #tpu.memory_space<vmem>>, vector<8x1xf32>,
    return
  }
  func.func @transform_0(%arg0: i32) -> (i32, i32) {
    %c0_i32 = arith.constant 0 : i32
    %c0_i32_0 = arith.constant 0 : i32
    return %arg0, %c0_i32 : i32, i32
  }
  func.func @transform_1(%arg0: i32) -> (i32, i32) {
    %c0_i32 = arith.constant 0 : i32
    %c0_i32_0 = arith.constant 0 : i32
    %c0_i32_1 = arith.constant 0 : i32
    return %c0_i32, %c0_i32_0 : i32, i32
  }
  func.func @transform_2(%arg0: i32) -> (i32, i32) {
    %c0_i32 = arith.constant 0 : i32
    %c0_i32_0 = arith.constant 0 : i32
    %c0_i32_1 = arith.constant 0 : i32
    return %c0_i32, %c0_i32_0 : i32, i32
  }
  func.func @transform_3(%arg0: i32) -> (i32, i32) {
    %c0_i32 = arith.constant 0 : i32
    %c0_i32_0 = arith.constant 0 : i32
    %c0_i32_1 = arith.constant 0 : i32
    return %c0_i32, %c0_i32_0 : i32, i32
  }
  func.func @transform_4(%arg0: i32) -> (i32, i32) {
    %c0_i32 = arith.constant 0 : i32
    %c0_i32_0 = arith.constant 0 : i32
    %c0_i32_1 = arith.constant 0 : i32
    return %c0_i32, %c0_i32_0 : i32, i32
  }
  func.func @transform_5(%arg0: i32) -> (i32, i32) {
    %c0_i32 = arith.constant 0 : i32
    %c0_i32_0 = arith.constant 0 : i32
    %c0_i32_1 = arith.constant 0 : i32
    return %c0_i32, %c0_i32_0 : i32, i32
  }
  func.func @transform_6(%arg0: i32) -> (i32, i32) {
    %c0_i32 = arith.constant 0 : i32
    %c0_i32_0 = arith.constant 0 : i32
    %c0_i32_1 = arith.constant 0 : i32
    return %c0_i32, %c0_i32_0 : i32, i32
  }
  func.func @transform_7(%arg0: i32) -> (i32, i32) {
    %c0_i32 = arith.constant 0 : i32
    %c0_i32_0 = arith.constant 0 : i32
    return %arg0, %c0_i32 : i32, i32
  }
}

</mosaic_0001>

<bundles_post_ra>
// kernel: tpu_custom_call.1
= control target key start
LH: loop header
LB: loop body
LE: loop exit
PB: predicated region body
PF: predicated region fallthrough
CT: control target
= control target key end

     0   :  { %s621_s0 = inlined_call_operand.hbm [shape: f32[8,32], index: 0, kind: input, shape index: {}]   ;;  %s622_s1 = inlined_call_operand.hbm [shape: bf16[32,256], index: 1, kind: input, shape index: {}]   ;;  %s623_s2 = inlined_call_operand.vmem [shape: f32[1,256], index: 2, kind: input, shape index: {}]   ;;  %s624_s3 = inlined_call_operand.hbm [shape: bf16[256,128], index: 3, kind: input, shape index: {}]   ;;  %s625_s4 = inlined_call_operand.vmem [shape: f32[1,128], index: 4, kind: input, shape index: {}]   ;;  %s626_s5 = inlined_call_operand.vmem [shape: f32[1,128], index: 5, kind: input, shape index: {}]   ;;  %s627_s6 = inlined_call_operand.<no memory space> [shape: f32[1,1], index: 6, kind: input, shape index: {}]   ;;  %s628_s7 = inlined_call_operand.vmem [shape: f32[8,1], index: 7, kind: output, shape index: {}]  }
   0x1   :  { %v12_v0 = vstv %s627_s6 }
   0x2   :  { %13 = vst [vmem:[#allocation2] sm:$0x1] %v12_v0 }
   0x3   :  { %14 = vsyncpa [#allocation4], 0 }
   0x4   :  { %15 = vsyncpa [#allocation6], 0  ;;  %s522_s26 = smov [#allocation5]   ;;  %s452_s30 = scalar_lea.hbm %s622_s1, 512 }
   0x5   :  { %s31_s27 = sshll.u32 %s522_s26, 4  ;;  %p453_p0 = scmp.ne.s32.totalorder %s622_s1, %s452_s30  ;;  %s32_s27 = int_to_ptr.vmem [resolvable:$true] %s31_s27 }
   0x6   :  { %p456_p1 = scmp.lt.u32.totalorder %s452_s30, %s622_s1 }
   0x8   :  { %p458_p2 = pnand %p456_p1, %p453_p0 }
   0xa   :  { %461 = shalt.err (!%p458_p2)
}
   0xb   :  { %s462_s6 = scalar_lea.vmem %s32_s27, 512  ;;  %p467_p4 = scmp.lt.s32.totalorder %s32_s27, %s32_s27 }
   0xc   :  { %p463_p3 = scmp.ne.s32.totalorder %s32_s27, %s462_s6  ;;  %p468_p5 = scmp.lt.s32.totalorder %s462_s6, %s462_s6 }
   0xe   :  { %p469_p6 = por %p468_p5, %p467_p4 }
  0x10   :  { %p470_p7 = pnand %p469_p6, %p463_p3 }
  0x12   :  { %473 = shalt.err (!%p470_p7)
}
  0x13   :  { %s523_s12 = smov 128   ;;  %s524_s13 = smov 8  }
  0x14   :  { %37 = dma.hbm_to_vmem [thread:$0]  %s622_s1, 512, %s32_s27, [#allocation6], %s523_s12, %s523_s12, %s524_s13  }
  0x15   :  { %s525_s16 = smov [#allocation3]   ;;  %s526_s18 = smov [#allocation7]  }
  0x16   :  { %s22_s17 = sshll.u32 %s525_s16, 4  ;;  %s45_s19 = sshll.u32 %s526_s18, 4  ;;  %s23_s17 = int_to_ptr.vmem [resolvable:$true] %s22_s17  ;;  %s46_s19 = int_to_ptr.vmem [resolvable:$true] %s45_s19 }
  0x17   :  { %s474_s22 = scalar_lea.hbm %s621_s0, 128 }
  0x18   :  { %p475_p8 = scmp.ne.s32.totalorder %s621_s0, %s474_s22  ;;  %p478_p9 = scmp.lt.u32.totalorder %s474_s22, %s621_s0 }
  0x1a   :  { %p480_p10 = pnand %p478_p9, %p475_p8 }
  0x1c   :  { %483 = shalt.err (!%p480_p10)
}
  0x1d   :  { %s484_s1 = scalar_lea.vmem %s23_s17, 128  ;;  %p489_p12 = scmp.lt.s32.totalorder %s23_s17, %s23_s17 }
  0x1e   :  { %p485_p11 = scmp.ne.s32.totalorder %s23_s17, %s484_s1  ;;  %p490_p13 = scmp.lt.s32.totalorder %s484_s1, %s484_s1 }
  0x20   :  { %p491_p0 = por %p490_p13, %p489_p12 }
  0x22   :  { %p492_p1 = pnand %p491_p0, %p485_p11 }
  0x24   :  { %495 = shalt.err (!%p492_p1)
}
  0x25   :  { %25 = dma.hbm_to_vmem [thread:$0]  %s621_s0, 128, %s23_s17, [#allocation4]  }
  0x26   :  { %s496_s8 = scalar_lea.hbm %s624_s3, 2048 }
  0x27   :  { %p497_p2 = scmp.ne.s32.totalorder %s624_s3, %s496_s8  ;;  %p500_p3 = scmp.lt.u32.totalorder %s496_s8, %s624_s3 }
  0x29   :  { %p502_p4 = pnand %p500_p3, %p497_p2 }
  0x2b   :  { %505 = shalt.err (!%p502_p4)
}
  0x2c   :  { %s506_s12 = scalar_lea.vmem %s46_s19, 2048  ;;  %p511_p6 = scmp.lt.s32.totalorder %s46_s19, %s46_s19 }
  0x2d   :  { %p507_p5 = scmp.ne.s32.totalorder %s46_s19, %s506_s12  ;;  %p512_p7 = scmp.lt.s32.totalorder %s506_s12, %s506_s12 }
  0x2f   :  { %p513_p8 = por %p512_p7, %p511_p6 }
  0x31   :  { %p514_p9 = pnand %p513_p8, %p507_p5 }
  0x33   :  { %517 = shalt.err (!%p514_p9)
}
  0x34   :  { %s527_s0 = smov 64   ;;  %s528_s13 = smov 4  }
  0x35   :  { %51 = dma.hbm_to_vmem [thread:$0]  %s624_s3, 2048, %s46_s19, [#allocation6], %s527_s0, %s527_s0, %s528_s13  }
  0x36   :  { %518 = dma.done.wait [#allocation4], 128  }
  0x37   :  { %519 = vsyncadd [#allocation4], 4294967168 }
  0x38   :  { %520 = dma.done.wait [#allocation6], 2560  }
  0x39   :  { %521 = vsyncadd [#allocation6], 4294964736  ;;  %v529_v1 = vmov 0   ;;  %v426_v2 = vld [vmem:[#allocation5 + $0x4] ss:$8 sps:$4 sm:$0xff]   ;;  %v68_v6 = vld [vmem:[#allocation3] sm:$0xff]  ;;  %v76_v24 = vlaneseq }
  0x3a   :  { %142 = vmatprep.mubr.bf16.mxu0 %v529_v1  ;;  %v428_v3 = vld [vmem:[#allocation5] ss:$8 sps:$4 sm:$0xff]   ;;  %110 = vmatprep.subr.bf16.mxu0 %v426_v2  ;;  %v429_v4 = vld [vmem:[#allocation5 + $0x14] ss:$8 sps:$4 sm:$0xff]   ;;  %v431_v5 = vld [vmem:[#allocation5 + $0x10] ss:$8 sps:$4 sm:$0xff]   ;;  %v69_v10 = vpack.c.bf16 %v68_v6, %v68_v6 }
  0x3b   :  { %111 = vmatpush1.bf16.msra.mxu0 %v428_v3  ;;  %v432_v7 = vld [vmem:[#allocation7 + $0x40] sm:$0xff]   ;;  %v434_v9 = vld [vmem:[#allocation7 + $0x48] sm:$0xff]   ;;  %vm106_vm0 = vcmask 261120   ;;  %v436_v12 = vld [vmem:[#allocation7 + $0x50] sm:$0xff]   ;;  %v77_v25 = vshrl.u32 %v76_v24, 7  ;;  %vm364_vm2 = vcmask 7168  }
  0x3c   :  { %112 = vmatprep.subr.bf16.mxu0 %v429_v4  ;;  %v433_v8 = vld [vmem:[#allocation7] sm:$0xff]   ;;  %396 = vmatprep.subr.bf16.mxu1 %v432_v7  ;;  %v435_v11 = vld [vmem:[#allocation7 + $0x8] sm:$0xff]   ;;  %v437_v13 = vld [vmem:[#allocation7 + $0x10] sm:$0xff]  }
  0x3d   :  { %397 = vmatpush3.bf16.msra.mxu1 %v433_v8  ;;  %v438_v14 = vld [vmem:[#allocation7 + $0x58] sm:$0xff]   ;;  %v440_v16 = vld [vmem:[#allocation7 + $0x60] sm:$0xff]   ;;  %v442_v18 = vld [vmem:[#allocation7 + $0x68] sm:$0xff]   ;;  %v78_v26 = vsub.s32 0, %v77_v25  ;;  %v82_v28 = vsub.s32 1, %v77_v25 }
  0x3e   :  { %398 = vmatprep.subr.bf16.mxu1 %v434_v9  ;;  %v439_v15 = vld [vmem:[#allocation7 + $0x18] sm:$0xff]   ;;  %v441_v17 = vld [vmem:[#allocation7 + $0x20] sm:$0xff]   ;;  %v443_v19 = vld [vmem:[#allocation7 + $0x28] sm:$0xff]  }
  0x3f   :  { %113 = vmatpush1.bf16.msra.mxu0 %v431_v5  ;;  %v444_v20 = vld [vmem:[#allocation7 + $0x70] sm:$0xff]   ;;  %v446_v22 = vld [vmem:[#allocation7 + $0x78] sm:$0xff]  }
  0x40   :  { %v445_v21 = vld [vmem:[#allocation7 + $0x30] sm:$0xff]   ;;  %v447_v23 = vld [vmem:[#allocation7 + $0x38] sm:$0xff]  }
  0x41   :  { %399 = vmatpush3.bf16.msra.mxu1 %v435_v11  ;;  %v74_v27 = vld [vmem:[%s623_s2] sm:$0x3] }
  0x42   :  { %376 = vmatmul.mubr.msk.bf16.vlgmr.msra.gmra.mrb[0].mxu0 %vm106_vm0, %v69_v10  ;;  %400 = vmatprep.subr.bf16.mxu1 %v436_v12  ;;  %v79_v29 = vrot.slane %v74_v27, %v78_v26  ;;  %v83_v30 = vrot.slane %v74_v27, %v82_v28  ;;  %v377_v43 = vld [vmem:[%s625_s4] ss:$0 sm:$0xff] }
  0x43   :  { %v394_v48 = vld [vmem:[%s626_s5] ss:$0 sm:$0xff] }
  0x44   :  { %v395_v51 = vld [vmem:[#allocation2] ss:$0 sm:$0xff] }
  0x45   :  { %401 = vmatpush3.bf16.msra.mxu1 %v437_v13 }
  0x46   :  { %402 = vmatprep.subr.bf16.mxu1 %v438_v14 }
  0x49   :  { %403 = vmatpush3.bf16.msra.mxu1 %v439_v15 }
  0x4a   :  { %404 = vmatprep.subr.bf16.mxu1 %v440_v16 }
  0x4d   :  { %405 = vmatpush3.bf16.msra.mxu1 %v441_v17 }
  0x4e   :  { %406 = vmatprep.subr.bf16.mxu1 %v442_v18 }
  0x51   :  { %407 = vmatpush3.bf16.msra.mxu1 %v443_v19 }
  0x52   :  { %408 = vmatprep.subr.bf16.mxu1 %v444_v20 }
  0x55   :  { %409 = vmatpush3.bf16.msra.mxu1 %v445_v21 }
  0x56   :  { %410 = vmatprep.subr.bf16.mxu1 %v446_v22 }
  0x59   :  { %411 = vmatpush3.bf16.msra.mxu1 %v447_v23 }
 0x115   :  { %v144_v31 = vpop.f32.mrb[0].mxu0 }
 0x116   :  { %v145_v32 = vadd.f32 %v144_v31, %v79_v29  ;;  %v146_v33 = vpop.f32.mrb[1].mxu0 }
 0x117   :  { %v147_v34 = vadd.f32 %v146_v33, %v83_v30  ;;  %v148_v35 = vpop.f32.mrb[2].mxu0 }
 0x118   :  { %v151_v36 = vmax.f32 %v145_v32, 0.0  ;;  %v149_v37 = vpop.f32.mrb[3].mxu0 }
 0x119   :  { %v152_v38 = vmax.f32 %v147_v34, 0.0 }
 0x11a   :  { %v153_v40 = vpack.c.bf16 %v151_v36, %v151_v36 }
 0x11b   :  { %v154_v39 = vpack.c.bf16 %v152_v38, %v152_v38 }
 0x11d   :  { %322 = vmatprep.mubr.bf16.mxu1 %v154_v39 }
 0x11e   :  { %323 = vmatmul.mubr.bf16.vlgmr.msra.gmra.mrb[0].mxu1 %v153_v40 }
 0x1f1   :  { %v412_v41 = vpop.f32.mrb[0].mxu1 }
 0x1f2   :  { %v413_v42 = vpop.f32.mrb[1].mxu1 }
 0x1f3   :  { %v414_v44 = vadd.f32 %v413_v42, %v412_v41  ;;  %v415_v45 = vpop.f32.mrb[2].mxu1 }
 0x1f4   :  { %v416_v46 = vpop.f32.mrb[3].mxu1 }
 0x1f5   :  { %v325_v47 = vadd.f32 %v414_v44, %v377_v43 }
 0x1f7   :  { %v330_v49 = vmax.f32 %v325_v47, 0.0 }
 0x1f9   :  { %v338_v50 = vmul.f32 %v394_v48, %v330_v49 }
 0x1fb   :  { %339 = vadd.xlane.f32.xlu0 %v338_v50 }
 0x288   :  { %v340_v52 = vpop.xlane.xlu0 %339 }
 0x289   :  { %v348_v53 = vadd.f32 %v395_v51, %v340_v52 }
 0x28b   :  { %v350_v54 = vand.u32 2147483647, %v348_v53  ;;  %v349_v1 = vmax.f32 %v348_v53, 0.0 }
 0x28d   :  { %v351_v55 = vsub.f32 0.0, %v350_v54 }
 0x28f   :  { %v352_v56 = vmul.f32 1.442695, %v351_v55 }
 0x291   :  { %448 = vpow2.f32 %v352_v56 }
 0x29b   :  { %v449_v57 = vpop.eup %448 }
 0x29c   :  { %v354_v58 = vadd.f32 1.0, %v449_v57  ;;  %v357_v59 = vmul.f32 -0.5, %v449_v57  ;;  %v360_v61 = vand.u32 2147483647, %v449_v57 }
 0x29e   :  { %450 = vlog2.f32 %v354_v58  ;;  %v358_v60 = vadd.f32 1.0, %v357_v59  ;;  %vm361_vm1 = vcmp.lt.f32.partialorder %v360_v61, 0.0004427343 }
 0x2a0   :  { %v359_v0 = vmul.f32 %v449_v57, %v358_v60 }
 0x2a8   :  { %v451_v62 = vpop.eup %450 }
 0x2a9   :  { %v356_v63 = vmul.f32 0.6931472, %v451_v62 }
 0x2ab   :  { %v362_v2 = vsel %vm361_vm1, %v359_v0, %v356_v63 }
 0x2ac   :  { %v363_v3 = vadd.f32 %v362_v2, %v349_v1 }
 0x2ae   :  { %365 = vst.msk [vmem:[%s628_s7] sm:$0xff] %vm364_vm2, %v363_v3 }
 0x2af   :  { %370 = vsyncpa [#allocation4], 1 }
 0x2b0   :  { %371 = vsyncpa [#allocation6], 1 }

</bundles_post_ra>
